<compile_context>
chip_gen: v6e
topology: v6e:2x2x1
jax: 0.10.0
libtpu: 0.0.40
codegen_flags: <defaults>
</compile_context>

<pallas_src>
import jax
import jax.numpy as jnp
from jax import lax
from jax.experimental import pallas as pl
from jax.experimental.pallas import tpu as pltpu


def _make_sc_kernel(num_layers, negative_slope, nb, T):
    """Builds the fused SpeakerClassifier kernel for static (num_layers, nb, T)."""
    R = nb * T                                          # merged row count (MXU M-dim)

    def kernel(x_ref, *refs):
        # refs = [w_0, scale_0, bias_0, ..., w_{L-1}, scale_{L-1}, bias_{L-1},
        #         wp, bp, o_ref]
        o_ref = refs[-1]
        wp_ref = refs[3 * num_layers]
        bp_ref = refs[3 * num_layers + 1]

        d_in = x_ref.shape[-1]
        h = x_ref[...].reshape(R, d_in)                 # layout-preserving leading-dim merge
        in_dtype = h.dtype

        # Local time index of every merged row, for conv halo / item-boundary masks.
        t_local = lax.broadcasted_iota(jnp.int32, (R, 1), 0) % T

        for l in range(num_layers):                     # static unroll (small layer count)
            w_ref = refs[3 * l]                         # [k, C_in, C_out] tap-major weights
            s_ref = refs[3 * l + 1]                     # [1, C_out]  folded BN scale
            b_ref = refs[3 * l + 2]                     # [1, C_out]  folded bias
            k = w_ref.shape[0]
            c_out = w_ref.shape[2]
            p = (k - 1) // 2                            # 'same' padding (odd k asserted in wrapper)

            conv = jnp.zeros((R, c_out), jnp.float32)
            for j in range(k):
                # Tile-aligned, full-width matmul per tap; f32 accumulation on the MXU.
                y = jnp.dot(h, w_ref[j], preferred_element_type=jnp.float32)
                s = p - j                               # signed sublane shift for this tap
                if s == 0:
                    conv = conv + y
                else:
                    y = pltpu.roll(y, shift=s % R, axis=0)      # XLU shift, no relayout
                    if s > 0:
                        mask = t_local >= s             # rows fed from the left zero-pad
                    else:
                        mask = t_local < (T + s)        # rows fed from the right zero-pad
                    conv = conv + jnp.where(mask, y, 0.0)

            # folded conv-bias + BatchNorm affine, then LeakyReLU(negative_slope)
            h = conv * s_ref[...] + b_ref[...]
            h = jnp.maximum(h, negative_slope * h)
            # NOTE: intermediates are rounded back to the compute dtype each layer
            # (matches mixed-precision practice; exact in the f32 demo).
            h = h.astype(in_dtype)

        logits = jnp.dot(h, wp_ref[...], preferred_element_type=jnp.float32)
        logits = logits + bp_ref[...]
        o_ref[...] = logits.astype(o_ref.dtype).reshape(o_ref.shape)   # lane-dense store

    return kernel


def prepare_speaker_classifier_params(conv_layers, proj_w, proj_b, *,
                                      eps=1e-5, compute_dtype=jnp.float32):
    """Fold conv bias + eval-mode BN into a per-channel affine and pad the
    projection to a lane-dense (multiple-of-128) speaker axis.

    Call ONCE at model-load time (not per forward call).
    conv_layers: list of (w [C_out, C_in, k], b, gamma, beta, running_mean, running_var)
    proj_w: [n_speakers, C_hid]   proj_b: [n_speakers]
    """
    prepped = []
    for (w, b, gamma, beta, mean, var) in conv_layers:
        c_out, c_in, k = w.shape
        assert k % 2 == 1, "SC_kernel_size must be odd for 'same' padding (k-1)//2"
        w_taps = jnp.transpose(w, (2, 1, 0)).astype(compute_dtype)    # [k, C_in, C_out]
        inv_std = gamma / jnp.sqrt(var + eps)
        eff_scale = inv_std.astype(jnp.float32).reshape(1, c_out)
        eff_bias = ((b - mean) * inv_std + beta).astype(jnp.float32).reshape(1, c_out)
        prepped.append((w_taps, eff_scale, eff_bias))

    n_speakers, c_hid = proj_w.shape
    n_pad = max(128, ((n_speakers + 127) // 128) * 128)               # lane-dense output width
    wp = jnp.zeros((c_hid, n_pad), compute_dtype)
    wp = wp.at[:, :n_speakers].set(jnp.transpose(proj_w).astype(compute_dtype))
    bp = jnp.zeros((1, n_pad), jnp.float32)
    bp = bp.at[:, :n_speakers].set(proj_b.astype(jnp.float32))
    return {"convs": prepped, "wp": wp, "bp": bp, "n_speakers": n_speakers}


def speaker_classifier_forward(x, params, *, negative_slope=0.2, rows_target=512):
    """Fused SpeakerClassifier forward.  x: [N, T, D_in] -> [N, T, n_speakers]."""
    convs, wp, bp = params["convs"], params["wp"], params["bp"]
    n_speakers = params["n_speakers"]
    N, T, d_in = x.shape
    c_hid, n_pad = wp.shape

    x = x.astype(wp.dtype)

    # Batch rows fused per grid step: big enough that the MXU M-dim is ~rows_target,
    # but keep >= 2 grid steps when possible so v7x's two TensorCores share the work.
    divs = [d for d in range(1, N + 1) if N % d == 0 and d * T <= rows_target] or [1]
    multi = [d for d in divs if N // d >= 2]
    nb = max(multi) if multi else max(divs)
    grid = (N // nb,)

    in_arrays = [x]
    in_specs = [pl.BlockSpec((nb, T, d_in), lambda g: (g, 0, 0))]
    for (w_taps, eff_scale, eff_bias) in convs:
        k, c_in, c_out = w_taps.shape
        in_arrays += [w_taps, eff_scale, eff_bias]
        in_specs += [
            pl.BlockSpec((k, c_in, c_out), lambda g: (0, 0, 0)),
            pl.BlockSpec((1, c_out), lambda g: (0, 0)),
            pl.BlockSpec((1, c_out), lambda g: (0, 0)),
        ]
    in_arrays += [wp, bp]
    in_specs += [
        pl.BlockSpec((c_hid, n_pad), lambda g: (0, 0)),
        pl.BlockSpec((1, n_pad), lambda g: (0, 0)),
    ]

    kernel = _make_sc_kernel(len(convs), negative_slope, nb, T)

    out_padded = pl.pallas_call(
        kernel,
        out_shape=jax.ShapeDtypeStruct((N, T, n_pad), x.dtype),
        grid_spec=pltpu.PrefetchScalarGridSpec(
            num_scalar_prefetch=0,
            grid=grid,
            in_specs=in_specs,
            out_specs=pl.BlockSpec((nb, T, n_pad), lambda g: (g, 0, 0)),
        ),
        compiler_params=pltpu.CompilerParams(
            dimension_semantics=("parallel",),
            # 32 MiB scoped VMEM: within physical on every generation (v5e/v6e/v7x)
            # and above v5e's 16 MiB default, so larger T tiles still fit.
            vmem_limit_bytes=32 * 1024 * 1024,
        ),
    )(*in_arrays)

    return out_padded[:, :, :n_speakers]


def reference_forward(x, conv_layers, proj_w, proj_b, *,
                      negative_slope=0.2, eps=1e-5):
    """Pure-JAX reference matching the PyTorch forward (BN in eval mode)."""
    h = jnp.transpose(x, (0, 2, 1))                                   # [N, C, T]
    for (w, b, gamma, beta, mean, var) in conv_layers:
        k = w.shape[-1]
        p = (k - 1) // 2
        h = lax.conv_general_dilated(
            h, w, window_strides=(1,), padding=[(p, p)],
            dimension_numbers=("NCH", "OIH", "NCH"))
        h = h + b[None, :, None]
        h = ((h - mean[None, :, None]) *
             (gamma[None, :, None] / jnp.sqrt(var[None, :, None] + eps)) +
             beta[None, :, None])
        h = jnp.where(h >= 0, h, negative_slope * h)
    h = jnp.transpose(h, (0, 2, 1))                                   # [N, T, C]
    return h @ proj_w.T + proj_b[None, None, :]


if __name__ == "__main__":
    # Small hparams consistent with the module's forward.
    N, T = 2, 16
    encoder_embedding_dim = 32
    SC_hidden_dim = 32
    SC_kernel_size = 3
    SC_n_convolutions = 2
    n_speakers = 16

    rng = jax.random.PRNGKey(0)
    keys = jax.random.split(rng, 1 + 6 * SC_n_convolutions + 2)
    ki = 0

    x = jax.random.normal(keys[ki], (N, T, encoder_embedding_dim), jnp.float32); ki += 1

    conv_layers = []
    in_dim = encoder_embedding_dim
    for i in range(SC_n_convolutions):
        out_dim = SC_hidden_dim
        w = 0.1 * jax.random.normal(keys[ki], (out_dim, in_dim, SC_kernel_size), jnp.float32); ki += 1
        b = 0.1 * jax.random.normal(keys[ki], (out_dim,), jnp.float32); ki += 1
        gamma = 1.0 + 0.1 * jax.random.normal(keys[ki], (out_dim,), jnp.float32); ki += 1
        beta = 0.1 * jax.random.normal(keys[ki], (out_dim,), jnp.float32); ki += 1
        mean = 0.1 * jax.random.normal(keys[ki], (out_dim,), jnp.float32); ki += 1
        var = 0.5 + jnp.abs(jax.random.normal(keys[ki], (out_dim,), jnp.float32)); ki += 1
        conv_layers.append((w, b, gamma, beta, mean, var))
        in_dim = out_dim

    proj_w = 0.1 * jax.random.normal(keys[ki], (n_speakers, SC_hidden_dim), jnp.float32); ki += 1
    proj_b = 0.1 * jax.random.normal(keys[ki], (n_speakers,), jnp.float32); ki += 1

    # Fold/pack parameters once (model-load time), then run the fused kernel.
    params = prepare_speaker_classifier_params(conv_layers, proj_w, proj_b)
    out = speaker_classifier_forward(x, params)
    out = jax.block_until_ready(out)

    ref = reference_forward(x, conv_layers, proj_w, proj_b)
    assert out.shape == (N, T, n_speakers)
    assert jnp.allclose(out, ref, atol=1e-4, rtol=1e-4), float(jnp.max(jnp.abs(out - ref)))
    print("KERNEL_OK")
</pallas_src>

<mosaic_0001>
module attributes {stable_mosaic.version = 11 : i64} {
  func.func @kernel(%arg0: i32, %arg1: memref<1x16x32xf32, #tpu.memory_space<vmem>>, %arg2: memref<3x32x32xf32, #tpu.memory_space<vmem>>, %arg3: memref<1x32xf32, #tpu.memory_space<vmem>>, %arg4: memref<1x32xf32, #tpu.memory_space<vmem>>, %arg5: memref<3x32x32xf32, #tpu.memory_space<vmem>>, %arg6: memref<1x32xf32, #tpu.memory_space<vmem>>, %arg7: memref<1x32xf32, #tpu.memory_space<vmem>>, %arg8: memref<32x128xf32, #tpu.memory_space<vmem>>, %arg9: memref<1x128xf32, #tpu.memory_space<vmem>>, %arg10: memref<1x16x128xf32, #tpu.memory_space<vmem>>) attributes {dimension_semantics = [#tpu.dimension_semantics<parallel>], iteration_bounds = array<i64: 2>, scalar_prefetch = 0 : i64, scratch_operands = 0 : i64, tpu.core_type = #tpu.core_type<tc>, window_params = [{transform_indices = @transform_0, window_bounds = array<i64: 1, 16, 32>}, {pipeline_mode = #tpu.pipeline_mode<synchronous>, transform_indices = @transform_1, window_bounds = array<i64: 3, 32, 32>}, {pipeline_mode = #tpu.pipeline_mode<synchronous>, transform_indices = @transform_2, window_bounds = array<i64: 1, 32>}, {pipeline_mode = #tpu.pipeline_mode<synchronous>, transform_indices = @transform_3, window_bounds = array<i64: 1, 32>}, {pipeline_mode = #tpu.pipeline_mode<synchronous>, transform_indices = @transform_4, window_bounds = array<i64: 3, 32, 32>}, {pipeline_mode = #tpu.pipeline_mode<synchronous>, transform_indices = @transform_5, window_bounds = array<i64: 1, 32>}, {pipeline_mode = #tpu.pipeline_mode<synchronous>, transform_indices = @transform_6, window_bounds = array<i64: 1, 32>}, {pipeline_mode = #tpu.pipeline_mode<synchronous>, transform_indices = @transform_7, window_bounds = array<i64: 32, 128>}, {pipeline_mode = #tpu.pipeline_mode<synchronous>, transform_indices = @transform_8, window_bounds = array<i64: 1, 128>}, {transform_indices = @transform_9, window_bounds = array<i64: 1, 16, 128>}]} {
    %c0 = arith.constant 0 : index
    %c0_0 = arith.constant 0 : index
    %c0_1 = arith.constant 0 : index
    %0 = vector.load %arg1[%c0, %c0_0, %c0_1] : memref<1x16x32xf32, #tpu.memory_space<vmem>>, vector<1x16x32xf32>
    %1 = vector.shape_cast %0 : vector<1x16x32xf32> to vector<16x32xf32>
    %2 = tpu.iota {dimensions = array<i32: 0>} : vector<16x1xi32>
    %c16_i32 = arith.constant 16 : i32
    %c0_i32 = arith.constant 0 : i32
    %3 = arith.cmpi eq, %c16_i32, %c0_i32 : i32
    %c1_i32 = arith.constant 1 : i32
    %4 = arith.select %3, %c1_i32, %c16_i32 : i32
    %5 = vector.broadcast %4 : i32 to vector<16x1xi32>
    %6 = arith.remsi %2, %5 : vector<16x1xi32>
    %c0_i32_2 = arith.constant 0 : i32
    %7 = vector.broadcast %c0_i32_2 : i32 to vector<16x1xi32>
    %8 = arith.cmpi ne, %6, %7 : vector<16x1xi32>
    %c0_i32_3 = arith.constant 0 : i32
    %9 = vector.broadcast %c0_i32_3 : i32 to vector<16x1xi32>
    %10 = arith.cmpi slt, %6, %9 : vector<16x1xi32>
    %c0_i32_4 = arith.constant 0 : i32
    %11 = arith.cmpi slt, %4, %c0_i32_4 : i32
    %12 = vector.broadcast %11 : i1 to vector<16x1xi1>
    %13 = vector.broadcast %12 : vector<16x1xi1> to vector<16x1xi1>
    %14 = arith.xori %10, %13 : vector<16x1xi1>
    %15 = arith.andi %14, %8 : vector<16x1xi1>
    %16 = vector.broadcast %4 : i32 to vector<16x1xi32>
    %17 = arith.addi %6, %16 : vector<16x1xi32>
    %18 = arith.select %15, %17, %6 : vector<16x1xi1>, vector<16x1xi32>
    %cst = arith.constant 0.000000e+00 : f32
    %19 = vector.broadcast %cst : f32 to vector<16x32xf32>
    %c0_5 = arith.constant 0 : index
    %c0_6 = arith.constant 0 : index
    %c0_7 = arith.constant 0 : index
    %20 = vector.load %arg2[%c0_5, %c0_6, %c0_7] : memref<3x32x32xf32, #tpu.memory_space<vmem>>, vector<1x32x32xf32>
    %21 = vector.shape_cast %20 : vector<1x32x32xf32> to vector<32x32xf32>
    %cst_8 = arith.constant dense<0.000000e+00> : vector<16x32xf32>
    %22 = tpu.matmul %1, %21, %cst_8 {dimension_numbers = #tpu.dot_dimension_numbers<[1], [0], [0], [1], [0, 0, 1, 1], [], []>} : vector<16x32xf32>, vector<32x32xf32>, vector<16x32xf32> -> vector<16x32xf32>
    %c1_i32_9 = arith.constant 1 : i32
    %23 = tpu.dynamic_rotate %22 by %c1_i32_9 dim 0 : vector<16x32xf32>, i32 -> vector<16x32xf32>
    %c1_i32_10 = arith.constant 1 : i32
    %24 = vector.broadcast %c1_i32_10 : i32 to vector<16x1xi32>
    %25 = arith.cmpi sge, %18, %24 : vector<16x1xi32>
    %cst_11 = arith.constant 0.000000e+00 : f32
    %26 = vector.shape_cast %25 : vector<16x1xi1> to vector<16x1xi1>
    %27 = vector.broadcast %26 : vector<16x1xi1> to vector<16x32xi1>
    %28 = vector.broadcast %cst_11 : f32 to vector<16x32xf32>
    %29 = arith.select %27, %23, %28 : vector<16x32xi1>, vector<16x32xf32>
    %30 = arith.addf %19, %29 : vector<16x32xf32>
    %c1 = arith.constant 1 : index
    %c0_12 = arith.constant 0 : index
    %c0_13 = arith.constant 0 : index
    %31 = vector.load %arg2[%c1, %c0_12, %c0_13] : memref<3x32x32xf32, #tpu.memory_space<vmem>>, vector<1x32x32xf32>
    %32 = vector.shape_cast %31 : vector<1x32x32xf32> to vector<32x32xf32>
    %cst_14 = arith.constant dense<0.000000e+00> : vector<16x32xf32>
    %33 = tpu.matmul %1, %32, %cst_14 {dimension_numbers = #tpu.dot_dimension_numbers<[1], [0], [0], [1], [0, 0, 1, 1], [], []>} : vector<16x32xf32>, vector<32x32xf32>, vector<16x32xf32> -> vector<16x32xf32>
    %34 = arith.addf %30, %33 : vector<16x32xf32>
    %c2 = arith.constant 2 : index
    %c0_15 = arith.constant 0 : index
    %c0_16 = arith.constant 0 : index
    %35 = vector.load %arg2[%c2, %c0_15, %c0_16] : memref<3x32x32xf32, #tpu.memory_space<vmem>>, vector<1x32x32xf32>
    %36 = vector.shape_cast %35 : vector<1x32x32xf32> to vector<32x32xf32>
    %cst_17 = arith.constant dense<0.000000e+00> : vector<16x32xf32>
    %37 = tpu.matmul %1, %36, %cst_17 {dimension_numbers = #tpu.dot_dimension_numbers<[1], [0], [0], [1], [0, 0, 1, 1], [], []>} : vector<16x32xf32>, vector<32x32xf32>, vector<16x32xf32> -> vector<16x32xf32>
    %c15_i32 = arith.constant 15 : i32
    %38 = tpu.dynamic_rotate %37 by %c15_i32 dim 0 : vector<16x32xf32>, i32 -> vector<16x32xf32>
    %c15_i32_18 = arith.constant 15 : i32
    %39 = vector.broadcast %c15_i32_18 : i32 to vector<16x1xi32>
    %40 = arith.cmpi slt, %18, %39 : vector<16x1xi32>
    %cst_19 = arith.constant 0.000000e+00 : f32
    %41 = vector.shape_cast %40 : vector<16x1xi1> to vector<16x1xi1>
    %42 = vector.broadcast %41 : vector<16x1xi1> to vector<16x32xi1>
    %43 = vector.broadcast %cst_19 : f32 to vector<16x32xf32>
    %44 = arith.select %42, %38, %43 : vector<16x32xi1>, vector<16x32xf32>
    %45 = arith.addf %34, %44 : vector<16x32xf32>
    %c0_20 = arith.constant 0 : index
    %c0_21 = arith.constant 0 : index
    %46 = vector.load %arg3[%c0_20, %c0_21] : memref<1x32xf32, #tpu.memory_space<vmem>>, vector<1x32xf32>
    %47 = vector.broadcast %46 : vector<1x32xf32> to vector<16x32xf32>
    %48 = arith.mulf %45, %47 : vector<16x32xf32>
    %c0_22 = arith.constant 0 : index
    %c0_23 = arith.constant 0 : index
    %49 = vector.load %arg4[%c0_22, %c0_23] : memref<1x32xf32, #tpu.memory_space<vmem>>, vector<1x32xf32>
    %50 = vector.broadcast %49 : vector<1x32xf32> to vector<16x32xf32>
    %51 = arith.addf %48, %50 : vector<16x32xf32>
    %cst_24 = arith.constant 2.000000e-01 : f32
    %52 = vector.broadcast %cst_24 : f32 to vector<16x32xf32>
    %53 = arith.mulf %52, %51 : vector<16x32xf32>
    %54 = arith.maximumf %51, %53 : vector<16x32xf32>
    %cst_25 = arith.constant 0.000000e+00 : f32
    %55 = vector.broadcast %cst_25 : f32 to vector<16x32xf32>
    %c0_26 = arith.constant 0 : index
    %c0_27 = arith.constant 0 : index
    %c0_28 = arith.constant 0 : index
    %56 = vector.load %arg5[%c0_26, %c0_27, %c0_28] : memref<3x32x32xf32, #tpu.memory_space<vmem>>, vector<1x32x32xf32>
    %57 = vector.shape_cast %56 : vector<1x32x32xf32> to vector<32x32xf32>
    %cst_29 = arith.constant dense<0.000000e+00> : vector<16x32xf32>
    %58 = tpu.matmul %54, %57, %cst_29 {dimension_numbers = #tpu.dot_dimension_numbers<[1], [0], [0], [1], [0, 0, 1, 1], [], []>} : vector<16x32xf32>, vector<32x32xf32>, vector<16x32xf32> -> vector<16x32xf32>
    %c1_i32_30 = arith.constant 1 : i32
    %59 = tpu.dynamic_rotate %58 by %c1_i32_30 dim 0 : vector<16x32xf32>, i32 -> vector<16x32xf32>
    %c1_i32_31 = arith.constant 1 : i32
    %60 = vector.broadcast %c1_i32_31 : i32 to vector<16x1xi32>
    %61 = arith.cmpi sge, %18, %60 : vector<16x1xi32>
    %cst_32 = arith.constant 0.000000e+00 : f32
    %62 = vector.shape_cast %61 : vector<16x1xi1> to vector<16x1xi1>
    %63 = vector.broadcast %62 : vector<16x1xi1> to vector<16x32xi1>
    %64 = vector.broadcast %cst_32 : f32 to vector<16x32xf32>
    %65 = arith.select %63, %59, %64 : vector<16x32xi1>, vector<16x32xf32>
    %66 = arith.addf %55, %65 : vector<16x32xf32>
    %c1_33 = arith.constant 1 : index
    %c0_34 = arith.constant 0 : index
    %c0_35 = arith.constant 0 : index
    %67 = vector.load %arg5[%c1_33, %c0_34, %c0_35] : memref<3x32x32xf32, #tpu.memory_space<vmem>>, vector<1x32x32xf32>
    %68 = vector.shape_cast %67 : vector<1x32x32xf32> to vector<32x32xf32>
    %cst_36 = arith.constant dense<0.000000e+00> : vector<16x32xf32>
    %69 = tpu.matmul %54, %68, %cst_36 {dimension_numbers = #tpu.dot_dimension_numbers<[1], [0], [0], [1], [0, 0, 1, 1], [], []>} : vector<16x32xf32>, vector<32x32xf32>, vector<16x32xf32> -> vector<16x32xf32>
    %70 = arith.addf %66, %69 : vector<16x32xf32>
    %c2_37 = arith.constant 2 : index
    %c0_38 = arith.constant 0 : index
    %c0_39 = arith.constant 0 : index
    %71 = vector.load %arg5[%c2_37, %c0_38, %c0_39] : memref<3x32x32xf32, #tpu.memory_space<vmem>>, vector<1x32x32xf32>
    %72 = vector.shape_cast %71 : vector<1x32x32xf32> to vector<32x32xf32>
    %cst_40 = arith.constant dense<0.000000e+00> : vector<16x32xf32>
    %73 = tpu.matmul %54, %72, %cst_40 {dimension_numbers = #tpu.dot_dimension_numbers<[1], [0], [0], [1], [0, 0, 1, 1], [], []>} : vector<16x32xf32>, vector<32x32xf32>, vector<16x32xf32> -> vector<16x32xf32>
    %c15_i32_41 = arith.constant 15 : i32
    %74 = tpu.dynamic_rotate %73 by %c15_i32_41 dim 0 : vector<16x32xf32>, i32 -> vector<16x32xf32>
    %c15_i32_42 = arith.constant 15 : i32
    %75 = vector.broadcast %c15_i32_42 : i32 to vector<16x1xi32>
    %76 = arith.cmpi slt, %18, %75 : vector<16x1xi32>
    %cst_43 = arith.constant 0.000000e+00 : f32
    %77 = vector.shape_cast %76 : vector<16x1xi1> to vector<16x1xi1>
    %78 = vector.broadcast %77 : vector<16x1xi1> to vector<16x32xi1>
    %79 = vector.broadcast %cst_43 : f32 to vector<16x32xf32>
    %80 = arith.select %78, %74, %79 : vector<16x32xi1>, vector<16x32xf32>
    %81 = arith.addf %70, %80 : vector<16x32xf32>
    %c0_44 = arith.constant 0 : index
    %c0_45 = arith.constant 0 : index
    %82 = vector.load %arg6[%c0_44, %c0_45] : memref<1x32xf32, #tpu.memory_space<vmem>>, vector<1x32xf32>
    %83 = vector.broadcast %82 : vector<1x32xf32> to vector<16x32xf32>
    %84 = arith.mulf %81, %83 : vector<16x32xf32>
    %c0_46 = arith.constant 0 : index
    %c0_47 = arith.constant 0 : index
    %85 = vector.load %arg7[%c0_46, %c0_47] : memref<1x32xf32, #tpu.memory_space<vmem>>, vector<1x32xf32>
    %86 = vector.broadcast %85 : vector<1x32xf32> to vector<16x32xf32>
    %87 = arith.addf %84, %86 : vector<16x32xf32>
    %cst_48 = arith.constant 2.000000e-01 : f32
    %88 = vector.broadcast %cst_48 : f32 to vector<16x32xf32>
    %89 = arith.mulf %88, %87 : vector<16x32xf32>
    %90 = arith.maximumf %87, %89 : vector<16x32xf32>
    %c0_49 = arith.constant 0 : index
    %c0_50 = arith.constant 0 : index
    %91 = vector.load %arg8[%c0_49, %c0_50] : memref<32x128xf32, #tpu.memory_space<vmem>>, vector<32x128xf32>
    %cst_51 = arith.constant dense<0.000000e+00> : vector<16x128xf32>
    %92 = tpu.matmul %90, %91, %cst_51 {dimension_numbers = #tpu.dot_dimension_numbers<[1], [0], [0], [1], [0, 0, 1, 1], [], []>} : vector<16x32xf32>, vector<32x128xf32>, vector<16x128xf32> -> vector<16x128xf32>
    %c0_52 = arith.constant 0 : index
    %c0_53 = arith.constant 0 : index
    %93 = vector.load %arg9[%c0_52, %c0_53] : memref<1x128xf32, #tpu.memory_space<vmem>>, vector<1x128xf32>
    %94 = vector.broadcast %93 : vector<1x128xf32> to vector<16x128xf32>
    %95 = arith.addf %92, %94 : vector<16x128xf32>
    %96 = vector.shape_cast %95 : vector<16x128xf32> to vector<1x16x128xf32>
    %c0_54 = arith.constant 0 : index
    %c0_55 = arith.constant 0 : index
    %c0_56 = arith.constant 0 : index
    %97 = vector.load %arg10[%c0_54, %c0_55, %c0_56] : memref<1x16x128xf32, #tpu.memory_space<vmem>>, vector<1x16x128xf32>
    tpu.vector_store %arg10[%c0_54, %c0_55, %c0_56], %96 {strides = array<i32>} : memref<1x16x128xf32, #tpu.memory_space<vmem>>, vector<1x16x128xf32>,
    return
  }
  func.func @transform_0(%arg0: i32) -> (i32, i32, i32) {
    %c0_i32 = arith.constant 0 : i32
    %c0_i32_0 = arith.constant 0 : i32
    %c0_i32_1 = arith.constant 0 : i32
    return %arg0, %c0_i32, %c0_i32_0 : i32, i32, i32
  }
  func.func @transform_1(%arg0: i32) -> (i32, i32, i32) {
    %c0_i32 = arith.constant 0 : i32
    %c0_i32_0 = arith.constant 0 : i32
    %c0_i32_1 = arith.constant 0 : i32
    %c0_i32_2 = arith.constant 0 : i32
    return %c0_i32, %c0_i32_0, %c0_i32_1 : i32, i32, i32
  }
  func.func @transform_2(%arg0: i32) -> (i32, i32) {
    %c0_i32 = arith.constant 0 : i32
    %c0_i32_0 = arith.constant 0 : i32
    %c0_i32_1 = arith.constant 0 : i32
    return %c0_i32, %c0_i32_0 : i32, i32
  }
  func.func @transform_3(%arg0: i32) -> (i32, i32) {
    %c0_i32 = arith.constant 0 : i32
    %c0_i32_0 = arith.constant 0 : i32
    %c0_i32_1 = arith.constant 0 : i32
    return %c0_i32, %c0_i32_0 : i32, i32
  }
  func.func @transform_4(%arg0: i32) -> (i32, i32, i32) {
    %c0_i32 = arith.constant 0 : i32
    %c0_i32_0 = arith.constant 0 : i32
    %c0_i32_1 = arith.constant 0 : i32
    %c0_i32_2 = arith.constant 0 : i32
    return %c0_i32, %c0_i32_0, %c0_i32_1 : i32, i32, i32
  }
  func.func @transform_5(%arg0: i32) -> (i32, i32) {
    %c0_i32 = arith.constant 0 : i32
    %c0_i32_0 = arith.constant 0 : i32
    %c0_i32_1 = arith.constant 0 : i32
    return %c0_i32, %c0_i32_0 : i32, i32
  }
  func.func @transform_6(%arg0: i32) -> (i32, i32) {
    %c0_i32 = arith.constant 0 : i32
    %c0_i32_0 = arith.constant 0 : i32
    %c0_i32_1 = arith.constant 0 : i32
    return %c0_i32, %c0_i32_0 : i32, i32
  }
  func.func @transform_7(%arg0: i32) -> (i32, i32) {
    %c0_i32 = arith.constant 0 : i32
    %c0_i32_0 = arith.constant 0 : i32
    %c0_i32_1 = arith.constant 0 : i32
    return %c0_i32, %c0_i32_0 : i32, i32
  }
  func.func @transform_8(%arg0: i32) -> (i32, i32) {
    %c0_i32 = arith.constant 0 : i32
    %c0_i32_0 = arith.constant 0 : i32
    %c0_i32_1 = arith.constant 0 : i32
    return %c0_i32, %c0_i32_0 : i32, i32
  }
  func.func @transform_9(%arg0: i32) -> (i32, i32, i32) {
    %c0_i32 = arith.constant 0 : i32
    %c0_i32_0 = arith.constant 0 : i32
    %c0_i32_1 = arith.constant 0 : i32
    return %arg0, %c0_i32, %c0_i32_0 : i32, i32, i32
  }
}

</mosaic_0001>

<bundles_post_ra>
// kernel: tpu_custom_call.1
= control target key start
LH: loop header
LB: loop body
LE: loop exit
PB: predicated region body
PF: predicated region fallthrough
CT: control target
= control target key end

     0   :  { %s1982_s0 = inlined_call_operand.hbm [shape: f32[2,16,32], index: 0, kind: input, shape index: {}]   ;;  %s1983_s1 = inlined_call_operand.hbm [shape: f32[3,32,32], index: 1, kind: input, shape index: {}]   ;;  %s1984_s2 = inlined_call_operand.vmem [shape: f32[1,32], index: 2, kind: input, shape index: {}]   ;;  %s1985_s3 = inlined_call_operand.vmem [shape: f32[1,32], index: 3, kind: input, shape index: {}]   ;;  %s1986_s4 = inlined_call_operand.hbm [shape: f32[3,32,32], index: 4, kind: input, shape index: {}]   ;;  %s1987_s5 = inlined_call_operand.vmem [shape: f32[1,32], index: 5, kind: input, shape index: {}]   ;;  %s1988_s6 = inlined_call_operand.vmem [shape: f32[1,32], index: 6, kind: input, shape index: {}]   ;;  %s1989_s7 = inlined_call_operand.hbm [shape: f32[32,128], index: 7, kind: input, shape index: {}]   ;;  %s1990_s8 = inlined_call_operand.vmem [shape: f32[1,128], index: 8, kind: input, shape index: {}]   ;;  %s1991_s9 = inlined_call_operand.hbm [shape: f32[2,16,128], index: 9, kind: output, shape index: {}]  }
   0x1   :  { %1998 = sst [smem:[#allocation15_spill]] %s1983_s1 }
   0x2   :  { %1999 = sst [smem:[#allocation16_spill]] %s1986_s4 }
   0x3   :  { %2000 = sst [smem:[#allocation17_spill]] %s1989_s7 }
   0x4   :  { %14 = vsyncpa [#allocation3], 0 }
   0x5   :  { %16 = vsyncpa [#allocation3 + $0x1], 0 }
   0x6   :  { %17 = vsyncpa [#allocation6], 0 }
   0x7   :  { %18 = vsyncpa [#allocation9], 0 }
   0x8   :  { %19 = vsyncpa [#allocation4], 0 }
   0x9   :  { %21 = vsyncpa [#allocation4 + $0x1], 0  ;;  %s1699_s30 = smov 0   ;;  %s1701_s10 = smov 0  }
   0xa   :  { %s1703_s11 = smov 0   ;;  %s1705_s12 = smov 0  }
   0xb LB: > { %s1720_s13 = sadd.s32 4294967295, %s1638_s12   ;;  %s1219_s14 = sadd.s32 4294967294, %s1638_s12   ;;  %s1638_s12 = sphi %s1705_s12, %s2028_s12   ;;  %s1634_s11 = sphi %s1703_s11, %s2027_s11   ;;  %s1630_s10 = sphi %s1701_s10, %s2026_s10   ;;  %s1626_s30 = sphi %s1699_s30, %s2025_s30  }
   0xc   : > { %p47_p0 = scmp.ne.s32.totalorder %s1630_s10, %s1626_s30  ;;  %p1992_p1 = scmp.eq.s32.totalorder %s1720_s13, 0 }
   0xd   : > { %p239_p2 = scmp.eq.s32.totalorder %s1720_s13, 1  ;;  %p245_p3 = scmp.eq.s32.totalorder %s1219_s14, 1 }
   0xe   : > { %p1729_p4 = por %p1992_p1, %p47_p0  ;;  %p1220_p5 = scmp.ge.s32.totalorder %s1638_s12, 1 }
   0xf   : > { %p1734_p6 = por %p245_p3, %p47_p0  ;;  %p252_p7 = scmp.lt.s32.totalorder %s1638_s12, 3 }
  0x10   : > { %s2001_s15 = scalar_select %p1729_p4, 1, 0 }
  0x11   : > { %s2002_s16 = scalar_select %p1734_p6, 1, 0 }
  0x12   : > { %p1739_p8 = pnand %p1220_p5, %p252_p7  ;;  %s1640_s18 = smov [#allocation5]  }
  0x13   : > { %s264_s19 = sshll.u32 %s1640_s18, 4  ;;  %s1641_s21 = smov [#allocation7]   ;;  %s265_s19 = int_to_ptr.vmem [resolvable:$true] %s264_s19 }
  0x14   : > { %s2003_s17 = scalar_select %p1739_p8, 1, 0 }
  0x15   : > { %p1395_p9 = pneg %p1739_p8  ;;  %s283_s22 = sshll.u32 %s1641_s21, 4  ;;  %s284_s22 = int_to_ptr.vmem [resolvable:$true] %s283_s22 }
  0x16   : > { %s1642_s23 = smov [#allocation8]   ;;  %s1471_s25 = scalar_lea.vmem %s265_s19, 1536 }
  0x17   : > { %p1748_p11 = pnand %p1395_p9, %p1992_p1  ;;  %s302_s24 = sshll.u32 %s1642_s23, 4  ;;  %s303_s24 = int_to_ptr.vmem [resolvable:$true] %s302_s24 }
  0x18   : > { %p1472_p13 = scmp.ne.s32.totalorder %s265_s19, %s1471_s25  ;;  %p1479_p5 = scmp.lt.s32.totalorder %s265_s19, %s265_s19 }
  0x19   : > { %p1462_p12 = pneg %p1748_p11  ;;  %p1480_p7 = scmp.lt.s32.totalorder %s1471_s25, %s1471_s25 }
  0x1b   : > { %p1474_p0 = pnand %p1472_p13, %p1462_p12  ;;  %p1481_p9 = por %p1480_p7, %p1479_p5 }
  0x1d   : > { %p1475_p3 = pneg %p1474_p0 }
  0x1f   : > { %p1482_p10 = pnand %p1481_p9, %p1475_p3 }
  0x21   : > { %1485 = shalt.err (!%p1482_p10)
}
  0x22   : > { %s1993_s26 = smov 128   ;;  %s1994_s27 = smov 8  }
  0x23   : > { %s2005_s1 = sld [smem:[#allocation15_spill]]  ;;  %s1497_s14 = scalar_lea.vmem %s284_s22, 1536 }
  0x24   : > { %p1498_p13 = scmp.ne.s32.totalorder %s284_s22, %s1497_s14  ;;  %p1505_p3 = scmp.lt.s32.totalorder %s284_s22, %s284_s22 }
  0x25   : > { %p1506_p10 = scmp.lt.s32.totalorder %s1497_s14, %s1497_s14 }
  0x26   : > { %p1500_p0 = pnand %p1498_p13, %p1462_p12 }
  0x27   : > { %p1507_p7 = por %p1506_p10, %p1505_p3 }
  0x28   : > { %p1501_p5 = pneg %p1500_p0 }
  0x29   : > { %1398 = dma.hbm_to_vmem [thread:$0]  (!%p1748_p11), %s2005_s1, 1536, %s265_s19, [#allocation6], %s1993_s26, %s1993_s26, %s1994_s27  }
  0x2a   : > { %p1508_p9 = pnand %p1507_p7, %p1501_p5 }
  0x2c   : > { %1511 = shalt.err (!%p1508_p9)
}
  0x2d   : > { %s2006_s4 = sld [smem:[#allocation16_spill]]  ;;  %s1523_s19 = scalar_lea.vmem %s303_s24, 512 }
  0x2e   : > { %p1524_p1 = scmp.ne.s32.totalorder %s303_s24, %s1523_s19  ;;  %p1531_p3 = scmp.lt.s32.totalorder %s303_s24, %s303_s24 }
  0x2f   : > { %p1532_p5 = scmp.lt.s32.totalorder %s1523_s19, %s1523_s19 }
  0x30   : > { %p1526_p13 = pnand %p1524_p1, %p1462_p12 }
  0x31   : > { %p1533_p10 = por %p1532_p5, %p1531_p3 }
  0x32   : > { %p1527_p0 = pneg %p1526_p13 }
  0x33   : > { %1401 = dma.hbm_to_vmem [thread:$0]  (!%p1748_p11), %s2006_s4, 1536, %s284_s22, [#allocation6], %s1993_s26, %s1993_s26, %s1994_s27  }
  0x34   : > { %p1534_p7 = pnand %p1533_p10, %p1527_p0 }
  0x36   : > { %1537 = shalt.err (!%p1534_p7)
}
  0x37   : > { %s2007_s7 = sld [smem:[#allocation17_spill]]  ;;  %s1788_s22 = sadd.s32 1, %s1638_s12  }
  0x38   : > { %s31_s20 = ssub.s32 %s1638_s12, %s1788_s22  ;;  %s34_s28 = sadd.s32 1, %s1634_s11 }
  0x39   : > { %p32_p1 = scmp.eq.s32.totalorder %s31_s20, 0  ;;  %p41_p12 = scmp.ne.s32.totalorder %s1634_s11, %s1630_s10 }
  0x3a   : > { %p42_p9 = scmp.eq.s32.totalorder %s1638_s12, 0  ;;  %p1416_p13 = scmp.lt.s32.totalorder %s1638_s12, 2 }
  0x3b   : > { %s1798_s29 = scalar_select %p32_p1, %s1634_s11, %s34_s28  }
  0x3c   : > { %p43_p0 = por %p42_p9, %p41_p12  ;;  %p1802_p3 = por %p239_p2, %p41_p12 }
  0x3d   : > { %1404 = dma.hbm_to_vmem [thread:$0]  (!%p1748_p11), %s2007_s7, 512, %s303_s24, [#allocation9], %s1993_s26, %s1993_s26, %s1994_s27  }
  0x3e   : > { %s2008_s14 = scalar_select %p1802_p3, 1, 0 }
  0x3f   : > { %s319_s18 = sand.u32 1, %s1634_s11   ;;  %s1258_s21 = sshll.u32 %s1638_s12, 8 }
  0x40   : > { %s1225_s24 = sshll.u32 %s319_s18, 4  ;;  %s1811_s25 = scalar_lea.hbm %s1982_s0, %s1258_s21 }
  0x41   : > { %s323_s20 = scalar_lea.vmem [#allocation2], %s1225_s24  ;;  %p1813_p11 = pnand %p1416_p13, %p43_p0 }
  0x42   : > { %s330_s28 = sshll.u32 %s323_s20, 4  ;;  %s1819_s27 = scalar_lea.sflag [#allocation3], %s319_s18  ;;  %s1817_s28 = int_to_ptr.vmem [resolvable:$true] %s330_s28 }
  0x43   : > { %s1538_s1 = scalar_lea.hbm %s1811_s25, 256  ;;  %p1540_p5 = pneg %p1813_p11 }
  0x44   : > { %p1539_p2 = scmp.ne.s32.totalorder %s1811_s25, %s1538_s1  ;;  %s1543_s24 = scalar_lea.hbm %s1982_s0, 512 }
  0x45   : > { %p1544_p1 = scmp.lt.s32.totalorder %s1811_s25, %s1982_s0  ;;  %p1545_p12 = scmp.lt.s32.totalorder %s1543_s24, %s1538_s1 }
  0x46   : > { %p1541_p10 = pnand %p1540_p5, %p1539_p2 }
  0x47   : > { %p1546_p9 = por %p1545_p12, %p1544_p1 }
  0x48   : > { %p1542_p7 = pneg %p1541_p10 }
  0x4a   : > { %p1547_p13 = pnand %p1546_p9, %p1542_p7 }
  0x4c   : > { %1550 = shalt.err (!%p1547_p13)
}
  0x4d   : > { %s1551_s18 = scalar_lea.vmem %s1817_s28, 256  ;;  %s1645_s4 = smov [#allocation2]  }
  0x4e   : > { %p1552_p0 = scmp.ne.s32.totalorder %s1817_s28, %s1551_s18  ;;  %s1556_s7 = sshll.u32 %s1645_s4, 4  ;;  %s1557_s7 = int_to_ptr.vmem [resolvable:$false] %s1556_s7 }
  0x4f   : > { %s1558_s21 = scalar_lea.vmem %s1557_s7, 512  ;;  %p1559_p10 = scmp.lt.s32.totalorder %s1817_s28, %s1557_s7 }
  0x50   : > { %p1554_p6 = pnand %p1552_p0, %p1540_p5  ;;  %p1560_p3 = scmp.lt.s32.totalorder %s1558_s21, %s1551_s18 }
  0x52   : > { %p1555_p2 = pneg %p1554_p6  ;;  %p1561_p4 = por %p1560_p3, %p1559_p10 }
  0x54   : > { %p1562_p8 = pnand %p1561_p4, %p1555_p2 }
  0x56   : > { %1565 = shalt.err (!%p1562_p8)
}
  0x57   : > { %s2010_s1 = smov 8   ;;  %s2011_s19 = smov 128  }
  0x58   : > { %1408 = dma.hbm_to_vmem [thread:$0]  (!%p1813_p11), %s1811_s25, 256, %s1817_s28, %s1819_s27, %s2011_s19, %s2011_s19, %s2010_s1  }
  0x59   : > { %p2012_p6 = scmp.ne.s32.totalorder %s2003_s17, 0 }
  0x5a   : > { %s1846_s4 = sand.u32 (!%p2012_p6), 1, %s1630_s10   ;;  %p2013_p4 = scmp.ne.s32.totalorder (!%p2012_p6), %s2001_s15, 0 }
  0x5b   : > { %342 = sbr.rel (%p2012_p6) target bundleno = 758 (0x2f6), region = 56  ;;  %s1229_s7 = sshll.u32 (!%p2012_p6), %s1846_s4, 4 }
  0x5c   : > { %s345_s24 = scalar_lea.sflag (!%p2012_p6), [#allocation3], %s1846_s4  ;;  %s348_s26 = scalar_lea.vmem (!%p2012_p6), [#allocation2], %s1229_s7 }
  0x60   : > { %1609 = dma.done.wait (%p2013_p4), %s345_s24, 256  }
  0x61   : > { %1611 = vsyncadd (%p2013_p4), %s345_s24, 4294967040  ;;  %p2014_p8 = scmp.eq.s32.totalorder %s1720_s13, 0 }
  0x63   : > { %1613 = dma.done.wait (%p2014_p8), [#allocation6], 3072   ;;  %p2015_p3 = pmov %p2014_p8 }
  0x65   : > { %1615 = vsyncadd (%p2015_p3), [#allocation6], 4294964224  ;;  %p2016_p11 = pmov %p2015_p3 }
  0x66   : > { %p2017_p5 = pmov %p2015_p3 }
  0x67   : > { %1617 = dma.done.wait (%p2016_p11), [#allocation9], 512  }
  0x68   : > { %1619 = vsyncadd (%p2017_p5), [#allocation9], 4294966784  ;;  %v427_v0 = vld [vmem:[#allocation5 + $0x18] sm:$0xff]  ;;  %v426_v1 = vld [vmem:[#allocation5 + $0x10] sm:$0xff]  ;;  %vm428_vm0 = vcmask 261120   ;;  %v397_v23 = vlaneseq  ;;  %s394_s19 = scalar_lea.vmem [#allocation10], %s1229_s7 }
  0x69   : > { %1302 = vmatprep.subr.mxu0 %v427_v0  ;;  %v529_v2 = vld [vmem:[#allocation5 + $0x38] sm:$0xff]  ;;  %v528_v3 = vld [vmem:[#allocation5 + $0x30] sm:$0xff]  ;;  %v425_v4 = vld [vmem:[#allocation5 + $0x8] sm:$0xff]  ;;  %s1117_s24 = sshll.u32 %s394_s19, 4  ;;  %s1104_s25 = scalar_lea.sflag [#allocation4], %s1846_s4  ;;  %s1934_s24 = int_to_ptr.vmem [resolvable:$true] %s1117_s24 }
  0x6a   : > { %1303 = vmatpush3.msra.mxu0 %v427_v0  ;;  %1313 = vmatprep.subr.mxu1 %v529_v2  ;;  %v395_v5 = vld [vmem:[%s348_s26] sm:$0xff]  ;;  %v527_v7 = vld [vmem:[#allocation5 + $0x28] sm:$0xff]  ;;  %v611_v9 = vld [vmem:[#allocation5 + $0x58] sm:$0xff]  ;;  %v1870_v24 = vshrl.u32 %v397_v23, 7  ;;  %s1566_s7 = scalar_lea.vmem %s1934_s24, 256  ;;  %p2022_p1 = scmp.ne.s32.totalorder %s2008_s14, 0 }
  0x6b   : > { %1304 = vmatprep.subr.mxu0 %v426_v1  ;;  %1314 = vmatpush3.msra.mxu1 %v529_v2  ;;  %v424_v6 = vld [vmem:[#allocation5] sm:$0xff]  ;;  %v396_v8 = vld [vmem:[%s348_s26 + $0x8] sm:$0xff]  ;;  %v610_v11 = vld [vmem:[#allocation5 + $0x50] sm:$0xff]  ;;  %s1259_s26 = sshll.u32 %s1720_s13, 8  ;;  %p1567_p7 = scmp.ne.s32.totalorder %s1934_s24, %s1566_s7 }
  0x6c   : > { %1305 = vmatpush3.msra.mxu0 %v426_v1  ;;  %1315 = vmatprep.subr.mxu1 %v528_v3  ;;  %v526_v10 = vld [vmem:[#allocation5 + $0x20] sm:$0xff]  ;;  %v609_v12 = vld [vmem:[#allocation5 + $0x48] sm:$0xff]  ;;  %v727_v14 = vld [vmem:[#allocation7 + $0x18] sm:$0xff]  ;;  %v404_v28 = vand.u32 15, %v1870_v24  ;;  %vm512_vm1 = vcmp.lt.s32.totalorder %v1870_v24, 1  ;;  %v399_v30 = vadd.s32 8, %v1870_v24  ;;  %s1939_s27 = scalar_lea.hbm %s1991_s9, %s1259_s26 }
  0x6d   : > { %1306 = vmatprep.subr.mxu0 %v425_v4  ;;  %1310 = vmatprep.mubr.msk.f32.mxu0 %vm428_vm0, %v395_v5  ;;  %v608_v13 = vld [vmem:[#allocation5 + $0x40] sm:$0xff]  ;;  %v821_v15 = vld [vmem:[#allocation7 + $0x38] sm:$0xff]  ;;  %v726_v16 = vld [vmem:[#allocation7 + $0x10] sm:$0xff]  ;;  %vm689_vm3 = vcmp.lt.s32.totalorder %v1870_v24, 7  ;;  %p1568_p12 = pnand %p1567_p7, %p2022_p1  ;;  %s1646_s13 = smov [#allocation10]  }
  0x6e   : > { %1307 = vmatpush3.msra.mxu0 %v425_v4  ;;  %1316 = vmatpush3.msra.mxu1 %v528_v3  ;;  %v820_v17 = vld [vmem:[#allocation7 + $0x30] sm:$0xff]  ;;  %v725_v18 = vld [vmem:[#allocation7 + $0x8] sm:$0xff]  ;;  %v724_v20 = vld [vmem:[#allocation7] sm:$0xff]  ;;  %vm1877_vm2 = vcmp.ge.s32.totalorder %v404_v28, 1  ;;  %v411_v34 = vand.u32 15, %v399_v30  ;;  %s1570_s28 = sshll.u32 %s1646_s13, 4  ;;  %s1571_s28 = int_to_ptr.vmem [resolvable:$false] %s1570_s28 }
  0x6f   : > { %1308 = vmatprep.subr.mxu0 %v424_v6  ;;  %1317 = vmatprep.subr.mxu1 %v527_v7  ;;  %v819_v19 = vld [vmem:[#allocation7 + $0x28] sm:$0xff]  ;;  %v818_v21 = vld [vmem:[#allocation7 + $0x20] sm:$0xff]  ;;  %v903_v22 = vld [vmem:[#allocation7 + $0x58] sm:$0xff]  ;;  %p1569_p9 = pneg %p1568_p12  ;;  %s1572_s23 = scalar_lea.vmem %s1571_s28, 512 }
  0x70   : > { %1309 = vmatpush3.msra.mxu0 %v424_v6  ;;  %1318 = vmatpush3.msra.mxu1 %v527_v7  ;;  %vm1886_vm4 = vcmp.lt.s32.totalorder %v411_v34, 15  ;;  %v1240_v47 = vld [vmem:[%s1984_s2] ss:$0 sm:$0xff]  ;;  %v902_v60 = vld [vmem:[#allocation7 + $0x50] sm:$0xff]  ;;  %v901_v61 = vld [vmem:[#allocation7 + $0x48] sm:$0xff]  ;;  %p1573_p13 = scmp.lt.s32.totalorder %s1934_s24, %s1571_s28  ;;  %p1574_p0 = scmp.lt.s32.totalorder %s1572_s23, %s1566_s7 }
  0x71   : > { %1311 = vmatmul.mubr.msk.f32.vlgmr.msra.gmra.mxu0 %vm428_vm0, %v396_v8  ;;  %1324 = vmatprep.subr.mxu0 %v611_v9  ;;  %v1241_v51 = vld [vmem:[%s1985_s3] ss:$0 sm:$0xff]  ;;  %v1012_v63 = vld [vmem:[#allocation8 + $0x18] sm:$0xff]  ;;  %v1011_v0 = vld [vmem:[#allocation8 + $0x10] sm:$0xff] }
  0x72   : > { %1325 = vmatpush3.msra.mxu0 %v611_v9  ;;  %1319 = vmatprep.subr.mxu1 %v526_v10  ;;  %v900_v62 = vld [vmem:[#allocation7 + $0x40] sm:$0xff]  ;;  %v1010_v1 = vld [vmem:[#allocation8 + $0x8] sm:$0xff]  ;;  %p1575_p2 = por %p1574_p0, %p1573_p13 }
  0x73   : > { %1326 = vmatprep.subr.mxu0 %v610_v11  ;;  %1320 = vmatpush3.msra.mxu1 %v526_v10  ;;  %v1009_v2 = vld [vmem:[#allocation8] sm:$0xff] }
  0x74   : > { %1321 = vmatprep.mubr.msk.f32.mxu1 %vm428_vm0, %v395_v5  ;;  %1327 = vmatpush3.msra.mxu0 %v610_v11  ;;  %v1250_v33 = vld [vmem:[%s1990_s8] ss:$0 sm:$0xff]  ;;  %p1576_p10 = pnand %p1575_p2, %p1569_p9 }
  0x75   : > { %1322 = vmatmul.mubr.msk.f32.vlgmr.msra.gmra.mxu1 %vm428_vm0, %v396_v8  ;;  %1328 = vmatprep.subr.mxu0 %v609_v12 }
  0x76   : > { %1329 = vmatpush3.msra.mxu0 %v609_v12  ;;  %1332 = vmatprep.mubr.msk.f32.mxu0 %vm428_vm0, %v395_v5 }
  0x77   : > { %1330 = vmatprep.subr.mxu0 %v608_v13  ;;  %1335 = vmatprep.subr.mxu1 %v727_v14 }
  0x78   : > { %1331 = vmatpush3.msra.mxu0 %v608_v13  ;;  %1336 = vmatpush3.msra.mxu1 %v727_v14 }
  0x79   : > { %1333 = vmatmul.mubr.msk.f32.vlgmr.msra.gmra.mxu0 %vm428_vm0, %v396_v8  ;;  %1346 = vmatprep.subr.mxu0 %v821_v15 }
  0x7a   : > { %1337 = vmatprep.subr.mxu1 %v726_v16  ;;  %1347 = vmatpush3.msra.mxu0 %v821_v15 }
  0x7b   : > { %1338 = vmatpush3.msra.mxu1 %v726_v16  ;;  %1348 = vmatprep.subr.mxu0 %v820_v17 }
  0x7c   : > { %1339 = vmatprep.subr.mxu1 %v725_v18  ;;  %1349 = vmatpush3.msra.mxu0 %v820_v17 }
  0x7d   : > { %1340 = vmatpush3.msra.mxu1 %v725_v18  ;;  %1350 = vmatprep.subr.mxu0 %v819_v19 }
  0x7e   : > { %1341 = vmatprep.subr.mxu1 %v724_v20  ;;  %1351 = vmatpush3.msra.mxu0 %v819_v19 }
  0x7f   : > { %1342 = vmatpush3.msra.mxu1 %v724_v20  ;;  %1352 = vmatprep.subr.mxu0 %v818_v21  ;;  %v1248_v20 = vld [vmem:[%s1987_s5] ss:$0 sm:$0xff] }
  0x80   : > { %1353 = vmatpush3.msra.mxu0 %v818_v21  ;;  %1357 = vmatprep.subr.mxu1 %v903_v22 }
  0x81   : > { %1368 = vmatprep.subr.mxu0 %v1012_v63 }
 0x131   : > { %v1312_v25 = vpop.f32.mrf.mxu0 }
 0x132   : > { %v511_v26 = vrot.slane %v1312_v25, 7  ;;  %v1249_v25 = vld [vmem:[%s1988_s6] ss:$0 sm:$0xff] }
 0x133   : > { %v501_v27 = vpop.f32.mrf.mxu0 }
 0x134   : > { %v510_v29 = vrot.slane %v501_v27, 7 }
 0x135   : > { %v1323_v31 = vpop.f32.mrf.mxu1 }
 0x136   : > { %v514_v32 = vsel %vm512_vm1, %v511_v26, %v510_v29  ;;  %v513_v38 = vsel %vm512_vm1, %v510_v29, %v511_v26 }
 0x137   : > { %v521_v36 = vsel %vm1877_vm2, %v514_v32, 0.0  ;;  %v596_v37 = vpop.f32.mrf.mxu1  ;;  %v606_v44 = vadd.f32 %v1323_v31, %v513_v38 }
 0x138   : > { %v605_v43 = vadd.f32 %v596_v37, %v521_v36 }
 0x139   : > { %v1334_v35 = vpop.f32.mrf.mxu0 }
 0x13a   : > { %v688_v40 = vrot.slane %v1334_v35, 1 }
 0x13b   : > { %v678_v39 = vpop.f32.mrf.mxu0 }
 0x13c   : > { %v687_v41 = vrot.slane %v678_v39, 1 }
 0x13e   : > { %v690_v45 = vsel %vm689_vm3, %v687_v41, %v688_v40  ;;  %v691_v46 = vsel %vm689_vm3, %v688_v40, %v687_v41 }
 0x13f   : > { %v699_v48 = vsel %vm1886_vm4, %v691_v46, 0.0  ;;  %v700_v49 = vadd.f32 %v690_v45, %v605_v43 }
 0x140   : > { %v701_v50 = vadd.f32 %v699_v48, %v606_v44 }
 0x141   : > { %v709_v52 = vmul.f32 %v1240_v47, %v700_v49 }
 0x142   : > { %v710_v53 = vmul.f32 %v1240_v47, %v701_v50 }
 0x143   : > { %v718_v54 = vadd.f32 %v1241_v51, %v709_v52 }
 0x144   : > { %v719_v55 = vadd.f32 %v1241_v51, %v710_v53 }
 0x145   : > { %v720_v56 = vmul.f32 0.2, %v718_v54 }
 0x146   : > { %v721_v57 = vmul.f32 0.2, %v719_v55 }
 0x147   : > { %v722_v58 = vmax.f32 %v718_v54, %v720_v56 }
 0x148   : > { %v723_v59 = vmax.f32 %v719_v55, %v721_v57 }
 0x149   : > { %1343 = vmatprep.mubr.msk.f32.mxu1 %vm428_vm0, %v722_v58  ;;  %1354 = vmatprep.mubr.msk.f32.mxu0 %vm428_vm0, %v722_v58 }
 0x14a   : > { %1344 = vmatmul.mubr.msk.f32.vlgmr.msra.gmra.mxu1 %vm428_vm0, %v723_v59  ;;  %1355 = vmatmul.mubr.msk.f32.vlgmr.msra.gmra.mxu0 %vm428_vm0, %v723_v59 }
 0x14b   : > { %1358 = vmatpush3.msra.mxu1 %v903_v22  ;;  %1365 = vmatprep.mubr.msk.f32.mxu1 %vm428_vm0, %v722_v58 }
 0x14c   : > { %1359 = vmatprep.subr.mxu1 %v902_v60  ;;  %1369 = vmatpush3.msra.mxu0 %v1012_v63 }
 0x14d   : > { %1360 = vmatpush3.msra.mxu1 %v902_v60  ;;  %1370 = vmatprep.subr.mxu0 %v1011_v0 }
 0x14e   : > { %1361 = vmatprep.subr.mxu1 %v901_v61  ;;  %1371 = vmatpush3.msra.mxu0 %v1011_v0 }
 0x14f   : > { %1362 = vmatpush3.msra.mxu1 %v901_v61  ;;  %1372 = vmatprep.subr.mxu0 %v1010_v1 }
 0x150   : > { %1363 = vmatprep.subr.mxu1 %v900_v62  ;;  %1373 = vmatpush3.msra.mxu0 %v1010_v1 }
 0x151   : > { %1364 = vmatpush3.msra.mxu1 %v900_v62  ;;  %1374 = vmatprep.subr.mxu0 %v1009_v2 }
 0x152   : > { %1366 = vmatmul.mubr.msk.f32.vlgmr.msra.gmra.mxu1 %vm428_vm0, %v723_v59  ;;  %1375 = vmatpush3.msra.mxu0 %v1009_v2 }
 0x20a   : > { %v1345_v3 = vpop.f32.mrf.mxu1  ;;  %v1356_v8 = vpop.f32.mrf.mxu0 }
 0x20b   : > { %v810_v6 = vrot.slane %v1345_v3, 7 }
 0x20c   : > { %v800_v4 = vpop.f32.mrf.mxu1  ;;  %v888_v13 = vpop.f32.mrf.mxu0 }
 0x20d   : > { %v809_v5 = vrot.slane %v800_v4, 7 }
 0x20f   : > { %v812_v7 = vsel %vm512_vm1, %v810_v6, %v809_v5  ;;  %v811_v11 = vsel %vm512_vm1, %v809_v5, %v810_v6 }
 0x210   : > { %v813_v10 = vsel %vm1877_vm2, %v812_v7, 0.0  ;;  %v898_v17 = vadd.f32 %v1356_v8, %v811_v11 }
 0x211   : > { %v897_v16 = vadd.f32 %v888_v13, %v813_v10 }
 0x212   : > { %v1367_v9 = vpop.f32.mrf.mxu1 }
 0x213   : > { %v980_v14 = vrot.slane %v1367_v9, 1 }
 0x214   : > { %v970_v12 = vpop.f32.mrf.mxu1 }
 0x215   : > { %v979_v15 = vrot.slane %v970_v12, 1 }
 0x217   : > { %v981_v18 = vsel %vm689_vm3, %v979_v15, %v980_v14  ;;  %v982_v19 = vsel %vm689_vm3, %v980_v14, %v979_v15 }
 0x218   : > { %v984_v21 = vsel %vm1886_vm4, %v982_v19, 0.0  ;;  %v985_v22 = vadd.f32 %v981_v18, %v897_v16 }
 0x219   : > { %v986_v23 = vadd.f32 %v984_v21, %v898_v17 }
 0x21a   : > { %v994_v26 = vmul.f32 %v1248_v20, %v985_v22 }
 0x21b   : > { %v995_v27 = vmul.f32 %v1248_v20, %v986_v23 }
 0x21c   : > { %v1003_v28 = vadd.f32 %v1249_v25, %v994_v26 }
 0x21d   : > { %v1004_v24 = vadd.f32 %v1249_v25, %v995_v27 }
 0x21e   : > { %v1005_v29 = vmul.f32 0.2, %v1003_v28 }
 0x21f   : > { %v1006_v30 = vmul.f32 0.2, %v1004_v24 }
 0x220   : > { %v1007_v31 = vmax.f32 %v1003_v28, %v1005_v29 }
 0x221   : > { %v1008_v32 = vmax.f32 %v1004_v24, %v1006_v30 }
 0x222   : > { %1376 = vmatprep.mubr.msk.f32.mxu0 %vm428_vm0, %v1007_v31 }
 0x223   : > { %1377 = vmatmul.mubr.msk.f32.vlgmr.msra.gmra.mxu0 %vm428_vm0, %v1008_v32 }
 0x2e3   : > { %v1378_v34 = vpop.f32.mrf.mxu0 }
 0x2e4   : > { %v1098_v35 = vadd.f32 %v1378_v34, %v1250_v33 }
 0x2e5   : > { %v1092_v36 = vpop.f32.mrf.mxu0 }
 0x2e6   : > { %1102 = vst [vmem:[%s394_s19 + $0x8] sm:$0xff] %v1098_v35  ;;  %v1093_v37 = vadd.f32 %v1250_v33, %v1092_v36 }
 0x2e8   : > { %1101 = vst [vmem:[%s394_s19] sm:$0xff] %v1093_v37 }
 0x2e9   : > { %1579 = shalt.err (!%p1576_p10)
}
 0x2ea   : > { %s1580_s20 = scalar_lea.hbm %s1939_s27, 256  ;;  %s1584_s1 = scalar_lea.hbm %s1991_s9, 512 }
 0x2eb   : > { %p1581_p6 = scmp.ne.s32.totalorder %s1939_s27, %s1580_s20  ;;  %p1585_p3 = scmp.lt.s32.totalorder %s1939_s27, %s1991_s9 }
 0x2ec   : > { %p1586_p11 = scmp.lt.s32.totalorder %s1584_s1, %s1580_s20 }
 0x2ed   : > { %p1582_p4 = pnand %p1581_p6, %p2022_p1 }
 0x2ee   : > { %p1587_p5 = por %p1586_p11, %p1585_p3 }
 0x2ef   : > { %p1583_p8 = pneg %p1582_p4 }
 0x2f1   : > { %p1588_p7 = pnand %p1587_p5, %p1583_p8 }
 0x2f3   : > { %1591 = shalt.err (!%p1588_p7)
}
 0x2f4   : > { %s1647_s15 = smov 128   ;;  %s1648_s17 = smov 8  }
 0x2f5   : > { %1393 = dma.vmem_to_hbm [thread:$0]  (%p2022_p1), %s1934_s24, 256, %s1939_s27, %s1104_s25, %s1647_s15, %s1647_s15, %s1648_s17  }
 0x2f6 PF: > { %s1132_s7 = sand.u32 1, %s1626_s30   ;;  %p2023_p12 = scmp.ne.s32.totalorder %s2002_s16, 0 }
 0x2f7   : > { %p2024_p9 = scmp.ge.s32.totalorder %s1638_s12, 2  ;;  %s1133_s13 = scalar_lea.sflag [#allocation4], %s1132_s7 }
 0x2f9   : > { %p1410_p13 = pnand %p2024_p9, %p2023_p12 }
 0x2fb   : > { %p1411_p0 = pneg %p1410_p13 }
 0x2fd   : > { %1621 = dma.done.wait (%p1411_p0), %s1133_s13, 256  }
 0x2fe   : > { %1623 = vsyncadd (%p1411_p0), %s1133_s13, 4294967040  ;;  %p24_p2 = scmp.ge.s32.totalorder %s1788_s22, 4   ;;  %s2025_s30 = smov %s1630_s10 }
 0x2ff   : > { %s2026_s10 = smov %s1634_s11  ;;  %s2027_s11 = smov %s1798_s29 }
 0x300   : > { %s2028_s12 = smov %s1788_s22  ;;  %26 = sbr.rel (!%p24_p2) target bundleno = 11 (0xb), region = 117 }
 0x305   :  { %1138 = vsyncpa [#allocation3], 1 }
 0x306   :  { %1140 = vsyncpa [#allocation3 + $0x1], 1 }
 0x307   :  { %1141 = vsyncpa [#allocation6], 1 }
 0x308   :  { %1142 = vsyncpa [#allocation9], 1 }
 0x309   :  { %1143 = vsyncpa [#allocation4], 1 }
 0x30a   :  { %1145 = vsyncpa [#allocation4 + $0x1], 1 }

</bundles_post_ra>
